<compile_context>
chip_gen: v7x
topology: tpu7x:2x2x1
jax: 0.10.0
libtpu: 0.0.40
codegen_flags: <defaults>
</compile_context>

<pallas_src>
import functools

import jax
import jax.numpy as jnp
from jax.experimental import pallas as pl
from jax.experimental.pallas import tpu as pltpu

_LANE = 128  # f32 lane tile width
_SUB = 8     # f32 sublane tile height


def _round_up(n, m):
    return ((n + m - 1) // m) * m


def _make_block_kernel(num_layers, back_len, combined_len, e_pad, fore_offset):
    """Kernel body for a fixed FC depth. All operands arrive padded / lane-dense."""

    def kernel(*refs):
        idx = 0
        x_ref = refs[idx]; idx += 1        # (TB, Lp)      flattened target history (matmul dtype)
        exf_ref = refs[idx]; idx += 1      # (TB, EXFp)    flattened exogenous, time-major (matmul dtype)
        basis_ref = refs[idx]; idx += 1    # (TB, Ep, S)   exogenous (E, time) layout, S = L + T, f32
        w0x_ref = refs[idx]; idx += 1      # (Lp, Hp)
        w0e_ref = refs[idx]; idx += 1      # (EXFp, Hp)
        b0_ref = refs[idx]; idx += 1       # (1, Hp)  f32
        hidden = []
        for _ in range(num_layers - 1):
            hidden.append((refs[idx], refs[idx + 1]))
            idx += 2
        wth_ref = refs[idx]; idx += 1      # (Hp, 2*LANE)  fused [backcast | forecast] theta weight
        bth_ref = refs[idx]; idx += 1      # (1, 2*LANE)   f32
        out_ref = refs[idx]                # (TB, S)       combined [backcast | forecast] output

        mm_dtype = w0x_ref.dtype

        # First FC layer: relu(cat([x, ex_flat]) @ W0 + b0), with the concat
        # replaced by two matmuls on the pre-split weight. f32 accumulation.
        h = jnp.dot(x_ref[...], w0x_ref[...], preferred_element_type=jnp.float32)
        h = h + jnp.dot(exf_ref[...], w0e_ref[...], preferred_element_type=jnp.float32)
        h = jnp.maximum(h + b0_ref[...], 0.0)
        for (w_ref, b_ref) in hidden:
            h = jnp.dot(h.astype(mm_dtype), w_ref[...],
                        preferred_element_type=jnp.float32)
            h = jnp.maximum(h + b_ref[...], 0.0)

        # Fused theta projection: one MXU pass producing both thetas.
        theta = jnp.dot(h.astype(mm_dtype), wth_ref[...],
                        preferred_element_type=jnp.float32) + bth_ref[...]
        theta_b = theta[:, :e_pad]                              # (TB, Ep)
        theta_f = theta[:, fore_offset:fore_offset + e_pad]     # (TB, Ep)

        # Combined basis contraction ('bz,bzs->bs' for back + fore at once):
        # lanes [0:L] use the backcast theta, lanes [L:S] the forecast theta;
        # E sits on the sublane axis -> lane-dense multiply, sublane reduce.
        lane = jax.lax.broadcasted_iota(jnp.int32, (1, 1, combined_len), 2)
        theta_sel = jnp.where(lane < back_len,
                              theta_b[:, :, None], theta_f[:, :, None])
        out_ref[...] = jnp.sum(theta_sel * basis_ref[...], axis=1)

    return kernel


def pack_block_params(params, *, num_layers, exogenous_dim, layer_width,
                      input_chunk_length, target_length,
                      matmul_dtype=jnp.float32):
    """One-time parameter prepack (padding / first-weight split / theta fuse)."""
    L, T, E, H = input_chunk_length, target_length, exogenous_dim, layer_width
    assert E <= _LANE, "fused theta layout hard-codes the forecast offset at lane 128"
    assert len(params["fc"]) == num_layers
    f32 = jnp.float32

    Lp = _round_up(L, _LANE)
    EXF = (L + T) * E
    EXFp = _round_up(EXF, _LANE)
    Hp = _round_up(H, _LANE)

    w0, b0 = params["fc"][0]
    w0 = jnp.asarray(w0, f32)
    w0x = jnp.zeros((Lp, Hp), f32).at[:L, :H].set(w0[:L]).astype(matmul_dtype)
    w0e = jnp.zeros((EXFp, Hp), f32).at[:EXF, :H].set(w0[L:]).astype(matmul_dtype)
    b0p = jnp.zeros((1, Hp), f32).at[:, :H].set(jnp.asarray(b0, f32).reshape(1, -1))

    hidden = []
    for (w, b) in params["fc"][1:]:
        wp = jnp.zeros((Hp, Hp), f32).at[:H, :H].set(
            jnp.asarray(w, f32)).astype(matmul_dtype)
        bp = jnp.zeros((1, Hp), f32).at[:, :H].set(jnp.asarray(b, f32).reshape(1, -1))
        hidden.append((wp, bp))

    wth = jnp.zeros((Hp, 2 * _LANE), f32)
    wth = wth.at[:H, :E].set(jnp.asarray(params["wb"], f32))
    wth = wth.at[:H, _LANE:_LANE + E].set(jnp.asarray(params["wf"], f32))
    wth = wth.astype(matmul_dtype)
    bth = jnp.zeros((1, 2 * _LANE), f32)
    bth = bth.at[:, :E].set(jnp.asarray(params["bb"], f32).reshape(1, -1))
    bth = bth.at[:, _LANE:_LANE + E].set(jnp.asarray(params["bf"], f32).reshape(1, -1))

    return {"w0x": w0x, "w0e": w0e, "b0": b0p, "hidden": tuple(hidden),
            "wth": wth, "bth": bth}


def _vmem_block_bytes(shape, dtype):
    itemsize = jnp.dtype(dtype).itemsize
    lead = 1
    for d in shape[:-2]:
        lead *= d
    return lead * _round_up(shape[-2], _SUB) * _round_up(shape[-1], _LANE) * itemsize


def block_forward(x, exogenous_x, packed, *, num_layers, exogenous_dim,
                  layer_width, input_chunk_length, target_length, nr_params,
                  batch_tile=None):
    """Pallas implementation of `_Block.forward` for g_type == EXOGENOUS."""
    if nr_params != 1:
        # The torch EXOGENOUS branch only produces target_length values per
        # row, so reshape(B, T, nr_params) is shape-consistent only for 1.
        raise NotImplementedError("EXOGENOUS _Block supports nr_params == 1 only.")
    assert len(packed["hidden"]) == num_layers - 1

    B = x.shape[0]
    L, T, E, H = input_chunk_length, target_length, exogenous_dim, layer_width
    S = L + T
    f32 = jnp.float32
    mm_dtype = packed["w0x"].dtype

    # Batch tiling: one grid step for small B; 256-row tiles (full MXU rows,
    # multiple parallel steps -> both v7x TensorCores) at production batch.
    if batch_tile is None:
        batch_tile = min(_round_up(max(B, 1), _SUB), 256)
    assert batch_tile % _SUB == 0
    Bp = _round_up(B, batch_tile)

    Lp = _round_up(L, _LANE)
    Ep = _round_up(E, _SUB)
    EXF = S * E
    EXFp = _round_up(EXF, _LANE)
    Hp = _round_up(H, _LANE)

    # ---- per-call activation layout plumbing (zero-padded) ----
    x_pad = jnp.zeros((Bp, Lp), mm_dtype).at[:B, :L].set(
        x.reshape(B, -1).astype(mm_dtype))
    exf_pad = jnp.zeros((Bp, EXFp), mm_dtype).at[:B, :EXF].set(
        exogenous_x.reshape(B, -1).astype(mm_dtype))
    # Combined basis: (B, E, S) with back in lanes [0:L], fore in [L:S].
    # Only E -> Ep and B -> Bp are padded; the time axis stays unpadded so the
    # dominant HBM stream carries no zero lanes (block covers full trailing
    # dims -> fully contiguous DMA).
    basis = jnp.transpose(exogenous_x.astype(f32), (0, 2, 1))      # (B, E, S)
    basis_pad = jnp.zeros((Bp, Ep, S), f32).at[:B, :E, :].set(basis)

    # ---- pallas_call assembly ----
    const2 = lambda i: (0, 0)
    args = [x_pad, exf_pad, basis_pad, packed["w0x"], packed["w0e"], packed["b0"]]
    in_specs = [
        pl.BlockSpec((batch_tile, Lp), lambda i: (i, 0)),
        pl.BlockSpec((batch_tile, EXFp), lambda i: (i, 0)),
        pl.BlockSpec((batch_tile, Ep, S), lambda i: (i, 0, 0)),
        pl.BlockSpec((Lp, Hp), const2),
        pl.BlockSpec((EXFp, Hp), const2),
        pl.BlockSpec((1, Hp), const2),
    ]
    blocks = [((batch_tile, Lp), mm_dtype), ((batch_tile, EXFp), mm_dtype),
              ((batch_tile, Ep, S), f32), ((Lp, Hp), mm_dtype),
              ((EXFp, Hp), mm_dtype), ((1, Hp), f32)]
    for (wp, bp) in packed["hidden"]:
        args += [wp, bp]
        in_specs += [pl.BlockSpec((Hp, Hp), const2), pl.BlockSpec((1, Hp), const2)]
        blocks += [((Hp, Hp), mm_dtype), ((1, Hp), f32)]
    args += [packed["wth"], packed["bth"]]
    in_specs += [pl.BlockSpec((Hp, 2 * _LANE), const2),
                 pl.BlockSpec((1, 2 * _LANE), const2)]
    blocks += [((Hp, 2 * _LANE), mm_dtype), ((1, 2 * _LANE), f32),
               ((batch_tile, S), f32)]  # output block

    out_shape = jax.ShapeDtypeStruct((Bp, S), f32)
    out_specs = pl.BlockSpec((batch_tile, S), lambda i: (i, 0))

    # Explicit VMEM budget only when the double-buffered footprint would
    # exceed the conservative default; capped under v7x's 64 MiB physical.
    vmem_est = 2 * sum(_vmem_block_bytes(s, d) for s, d in blocks)
    vmem_limit = None
    if vmem_est > 12 * 1024 * 1024:
        vmem_limit = min(int(vmem_est * 1.5) + (2 << 20), 48 * 1024 * 1024)

    flops = (2 * Bp * Hp * (Lp + EXFp + (num_layers - 1) * Hp + 2 * _LANE)
             + 3 * Bp * Ep * S)
    bytes_accessed = int(sum(int(a.size) * a.dtype.itemsize for a in args)
                         + Bp * S * 4)
    cost = pl.CostEstimate(flops=int(flops), transcendentals=0,
                           bytes_accessed=bytes_accessed)

    kernel = _make_block_kernel(num_layers, L, S, Ep, _LANE)
    out_pad = pl.pallas_call(
        kernel,
        out_shape=out_shape,
        grid_spec=pl.GridSpec(
            grid=(Bp // batch_tile,),
            in_specs=in_specs,
            out_specs=out_specs,
        ),
        compiler_params=pltpu.CompilerParams(
            dimension_semantics=("parallel",),
            vmem_limit_bytes=vmem_limit),
        cost_estimate=cost,
    )(*args)

    x_hat = out_pad[:B, :L]
    y_hat = out_pad[:B, L:].reshape(B, T, nr_params)
    return x_hat, y_hat


def block_forward_ref(x, exogenous_x, params, *, input_chunk_length,
                      target_length, nr_params):
    """Pure-JAX reference (mirrors the PyTorch forward exactly)."""
    B = x.shape[0]
    h = jnp.concatenate([x.reshape(B, -1), exogenous_x.reshape(B, -1)], axis=1)
    for (w, b) in params["fc"]:
        h = jax.nn.relu(h @ w + b)
    theta_b = h @ params["wb"] + params["bb"]
    theta_f = h @ params["wf"] + params["bf"]
    basis = jnp.transpose(exogenous_x, (0, 2, 1))      # (B, E, L+T)
    back = basis[:, :, :input_chunk_length]
    fore = basis[:, :, input_chunk_length:]
    x_hat = jnp.einsum("bz,bzs->bs", theta_b, back)
    y_hat = jnp.einsum("bz,bzs->bs", theta_f, fore)
    return x_hat, y_hat.reshape(B, target_length, nr_params)


def init_params(key, *, num_layers, exogenous_dim, layer_width,
                input_chunk_length, target_length):
    """Deterministic synthetic parameter init (shapes from _Block.__init__)."""
    units = (input_chunk_length + target_length) * exogenous_dim + input_chunk_length * 1
    dims = [units] + [layer_width] * num_layers
    keys = jax.random.split(key, 2 * num_layers + 4)
    fc = []
    ki = 0
    for i in range(num_layers):
        w = 0.1 * jax.random.normal(keys[ki], (dims[i], dims[i + 1]), jnp.float32); ki += 1
        b = 0.1 * jax.random.normal(keys[ki], (1, dims[i + 1]), jnp.float32); ki += 1
        fc.append((w, b))
    # EXOGENOUS: backcast/forecast linear layers map layer_width -> exogenous_dim.
    wb = 0.1 * jax.random.normal(keys[ki], (layer_width, exogenous_dim), jnp.float32); ki += 1
    bb = 0.1 * jax.random.normal(keys[ki], (1, exogenous_dim), jnp.float32); ki += 1
    wf = 0.1 * jax.random.normal(keys[ki], (layer_width, exogenous_dim), jnp.float32); ki += 1
    bf = 0.1 * jax.random.normal(keys[ki], (1, exogenous_dim), jnp.float32); ki += 1
    return {"fc": fc, "wb": wb, "bb": bb, "wf": wf, "bf": bf}


if __name__ == "__main__":
    # Config matching the module docstring example:
    #   _Block(3, 6, 4, 1, 3, 10, 5, _GType.EXOGENOUS)
    num_layers = 3
    exogenous_dim = 6
    layer_width = 4
    nr_params = 1
    input_chunk_length = 10
    target_length = 5
    batch = 2

    key = jax.random.PRNGKey(0)
    kx, kex, kp = jax.random.split(key, 3)
    x = jax.random.uniform(kx, (batch, input_chunk_length, 1), jnp.float32)
    e_x = jax.random.uniform(
        kex, (batch, input_chunk_length + target_length, exogenous_dim), jnp.float32)

    params = init_params(
        kp, num_layers=num_layers, exogenous_dim=exogenous_dim,
        layer_width=layer_width, input_chunk_length=input_chunk_length,
        target_length=target_length)

    cfg = dict(num_layers=num_layers, exogenous_dim=exogenous_dim,
               layer_width=layer_width, input_chunk_length=input_chunk_length,
               target_length=target_length)

    # One-time parameter prepack (hoisted out of the per-call forward).
    packed_f32 = pack_block_params(params, matmul_dtype=jnp.float32, **cfg)
    packed_bf16 = pack_block_params(params, matmul_dtype=jnp.bfloat16, **cfg)

    fwd = jax.jit(functools.partial(block_forward, nr_params=nr_params, **cfg))

    # f32 path: bit-faithful to the PyTorch forward (tight tolerance).
    x_hat, y_hat = fwd(x, e_x, packed_f32)
    jax.block_until_ready((x_hat, y_hat))

    x_ref, y_ref = block_forward_ref(
        x, e_x, params, input_chunk_length=input_chunk_length,
        target_length=target_length, nr_params=nr_params)
    assert x_hat.shape == (batch, input_chunk_length)
    assert y_hat.shape == (batch, target_length, nr_params)
    assert jnp.allclose(x_hat, x_ref, atol=1e-5, rtol=1e-5)
    assert jnp.allclose(y_hat, y_ref, atol=1e-5, rtol=1e-5)

    # bf16 matmul path (v6e/v7x MXU-native); f32 accumulation, f32 basis.
    xb, yb = fwd(x, e_x, packed_bf16)
    jax.block_until_ready((xb, yb))
    assert jnp.allclose(xb, x_ref, atol=5e-2, rtol=5e-2)
    assert jnp.allclose(yb, y_ref, atol=5e-2, rtol=5e-2)

    print("KERNEL_OK")
</pallas_src>

<mosaic_0001>
module attributes {stable_mosaic.version = 11 : i64} {
  func.func @kernel(%arg0: i32, %arg1: memref<8x128xf32, #tpu.memory_space<vmem>>, %arg2: memref<8x128xf32, #tpu.memory_space<vmem>>, %arg3: memref<8x8x15xf32, #tpu.memory_space<vmem>>, %arg4: memref<128x128xf32, #tpu.memory_space<vmem>>, %arg5: memref<128x128xf32, #tpu.memory_space<vmem>>, %arg6: memref<1x128xf32, #tpu.memory_space<vmem>>, %arg7: memref<128x128xf32, #tpu.memory_space<vmem>>, %arg8: memref<1x128xf32, #tpu.memory_space<vmem>>, %arg9: memref<128x128xf32, #tpu.memory_space<vmem>>, %arg10: memref<1x128xf32, #tpu.memory_space<vmem>>, %arg11: memref<128x256xf32, #tpu.memory_space<vmem>>, %arg12: memref<1x256xf32, #tpu.memory_space<vmem>>, %arg13: memref<8x15xf32, #tpu.memory_space<vmem>>) attributes {dimension_semantics = [#tpu.dimension_semantics<parallel>], iteration_bounds = array<i64: 1>, scalar_prefetch = 0 : i64, scratch_operands = 0 : i64, tpu.core_type = #tpu.core_type<tc>, window_params = [{transform_indices = @transform_0, window_bounds = array<i64: 8, 128>}, {transform_indices = @transform_1, window_bounds = array<i64: 8, 128>}, {transform_indices = @transform_2, window_bounds = array<i64: 8, 8, 15>}, {pipeline_mode = #tpu.pipeline_mode<synchronous>, transform_indices = @transform_3, window_bounds = array<i64: 128, 128>}, {pipeline_mode = #tpu.pipeline_mode<synchronous>, transform_indices = @transform_4, window_bounds = array<i64: 128, 128>}, {pipeline_mode = #tpu.pipeline_mode<synchronous>, transform_indices = @transform_5, window_bounds = array<i64: 1, 128>}, {pipeline_mode = #tpu.pipeline_mode<synchronous>, transform_indices = @transform_6, window_bounds = array<i64: 128, 128>}, {pipeline_mode = #tpu.pipeline_mode<synchronous>, transform_indices = @transform_7, window_bounds = array<i64: 1, 128>}, {pipeline_mode = #tpu.pipeline_mode<synchronous>, transform_indices = @transform_8, window_bounds = array<i64: 128, 128>}, {pipeline_mode = #tpu.pipeline_mode<synchronous>, transform_indices = @transform_9, window_bounds = array<i64: 1, 128>}, {pipeline_mode = #tpu.pipeline_mode<synchronous>, transform_indices = @transform_10, window_bounds = array<i64: 128, 256>}, {pipeline_mode = #tpu.pipeline_mode<synchronous>, transform_indices = @transform_11, window_bounds = array<i64: 1, 256>}, {transform_indices = @transform_12, window_bounds = array<i64: 8, 15>}]} {
    %c0 = arith.constant 0 : index
    %c0_0 = arith.constant 0 : index
    %0 = vector.load %arg1[%c0, %c0_0] : memref<8x128xf32, #tpu.memory_space<vmem>>, vector<8x128xf32>
    %c0_1 = arith.constant 0 : index
    %c0_2 = arith.constant 0 : index
    %1 = vector.load %arg4[%c0_1, %c0_2] : memref<128x128xf32, #tpu.memory_space<vmem>>, vector<128x128xf32>
    %cst = arith.constant dense<0.000000e+00> : vector<8x128xf32>
    %2 = tpu.matmul %0, %1, %cst {dimension_numbers = #tpu.dot_dimension_numbers<[1], [0], [0], [1], [0, 0, 1, 1], [], []>} : vector<8x128xf32>, vector<128x128xf32>, vector<8x128xf32> -> vector<8x128xf32>
    %c0_3 = arith.constant 0 : index
    %c0_4 = arith.constant 0 : index
    %3 = vector.load %arg2[%c0_3, %c0_4] : memref<8x128xf32, #tpu.memory_space<vmem>>, vector<8x128xf32>
    %c0_5 = arith.constant 0 : index
    %c0_6 = arith.constant 0 : index
    %4 = vector.load %arg5[%c0_5, %c0_6] : memref<128x128xf32, #tpu.memory_space<vmem>>, vector<128x128xf32>
    %cst_7 = arith.constant dense<0.000000e+00> : vector<8x128xf32>
    %5 = tpu.matmul %3, %4, %cst_7 {dimension_numbers = #tpu.dot_dimension_numbers<[1], [0], [0], [1], [0, 0, 1, 1], [], []>} : vector<8x128xf32>, vector<128x128xf32>, vector<8x128xf32> -> vector<8x128xf32>
    %6 = arith.addf %2, %5 : vector<8x128xf32>
    %c0_8 = arith.constant 0 : index
    %c0_9 = arith.constant 0 : index
    %7 = vector.load %arg6[%c0_8, %c0_9] : memref<1x128xf32, #tpu.memory_space<vmem>>, vector<1x128xf32>
    %8 = vector.broadcast %7 : vector<1x128xf32> to vector<8x128xf32>
    %9 = arith.addf %6, %8 : vector<8x128xf32>
    %cst_10 = arith.constant 0.000000e+00 : f32
    %10 = vector.broadcast %cst_10 : f32 to vector<8x128xf32>
    %11 = arith.maximumf %9, %10 : vector<8x128xf32>
    %c0_11 = arith.constant 0 : index
    %c0_12 = arith.constant 0 : index
    %12 = vector.load %arg7[%c0_11, %c0_12] : memref<128x128xf32, #tpu.memory_space<vmem>>, vector<128x128xf32>
    %cst_13 = arith.constant dense<0.000000e+00> : vector<8x128xf32>
    %13 = tpu.matmul %11, %12, %cst_13 {dimension_numbers = #tpu.dot_dimension_numbers<[1], [0], [0], [1], [0, 0, 1, 1], [], []>} : vector<8x128xf32>, vector<128x128xf32>, vector<8x128xf32> -> vector<8x128xf32>
    %c0_14 = arith.constant 0 : index
    %c0_15 = arith.constant 0 : index
    %14 = vector.load %arg8[%c0_14, %c0_15] : memref<1x128xf32, #tpu.memory_space<vmem>>, vector<1x128xf32>
    %15 = vector.broadcast %14 : vector<1x128xf32> to vector<8x128xf32>
    %16 = arith.addf %13, %15 : vector<8x128xf32>
    %cst_16 = arith.constant 0.000000e+00 : f32
    %17 = vector.broadcast %cst_16 : f32 to vector<8x128xf32>
    %18 = arith.maximumf %16, %17 : vector<8x128xf32>
    %c0_17 = arith.constant 0 : index
    %c0_18 = arith.constant 0 : index
    %19 = vector.load %arg9[%c0_17, %c0_18] : memref<128x128xf32, #tpu.memory_space<vmem>>, vector<128x128xf32>
    %cst_19 = arith.constant dense<0.000000e+00> : vector<8x128xf32>
    %20 = tpu.matmul %18, %19, %cst_19 {dimension_numbers = #tpu.dot_dimension_numbers<[1], [0], [0], [1], [0, 0, 1, 1], [], []>} : vector<8x128xf32>, vector<128x128xf32>, vector<8x128xf32> -> vector<8x128xf32>
    %c0_20 = arith.constant 0 : index
    %c0_21 = arith.constant 0 : index
    %21 = vector.load %arg10[%c0_20, %c0_21] : memref<1x128xf32, #tpu.memory_space<vmem>>, vector<1x128xf32>
    %22 = vector.broadcast %21 : vector<1x128xf32> to vector<8x128xf32>
    %23 = arith.addf %20, %22 : vector<8x128xf32>
    %cst_22 = arith.constant 0.000000e+00 : f32
    %24 = vector.broadcast %cst_22 : f32 to vector<8x128xf32>
    %25 = arith.maximumf %23, %24 : vector<8x128xf32>
    %c0_23 = arith.constant 0 : index
    %c0_24 = arith.constant 0 : index
    %26 = vector.load %arg11[%c0_23, %c0_24] : memref<128x256xf32, #tpu.memory_space<vmem>>, vector<128x256xf32>
    %cst_25 = arith.constant dense<0.000000e+00> : vector<8x256xf32>
    %27 = tpu.matmul %25, %26, %cst_25 {dimension_numbers = #tpu.dot_dimension_numbers<[1], [0], [0], [1], [0, 0, 1, 1], [], []>} : vector<8x128xf32>, vector<128x256xf32>, vector<8x256xf32> -> vector<8x256xf32>
    %c0_26 = arith.constant 0 : index
    %c0_27 = arith.constant 0 : index
    %28 = vector.load %arg12[%c0_26, %c0_27] : memref<1x256xf32, #tpu.memory_space<vmem>>, vector<1x256xf32>
    %29 = vector.broadcast %28 : vector<1x256xf32> to vector<8x256xf32>
    %30 = arith.addf %27, %29 : vector<8x256xf32>
    %31 = vector.extract_strided_slice %30 {offsets = [0, 0], sizes = [8, 8], strides = [1, 1]} : vector<8x256xf32> to vector<8x8xf32>
    %32 = vector.extract_strided_slice %30 {offsets = [0, 128], sizes = [8, 8], strides = [1, 1]} : vector<8x256xf32> to vector<8x8xf32>
    %33 = tpu.iota {dimensions = array<i32: 2>} : vector<1x1x15xi32>
    %c10_i32 = arith.constant 10 : i32
    %34 = vector.broadcast %c10_i32 : i32 to vector<1x1x15xi32>
    %35 = arith.cmpi slt, %33, %34 : vector<1x1x15xi32>
    %36 = vector.shape_cast %31 : vector<8x8xf32> to vector<8x8x1xf32>
    %37 = vector.shape_cast %32 : vector<8x8xf32> to vector<8x8x1xf32>
    %38 = vector.shape_cast %35 : vector<1x1x15xi1> to vector<1x1x15xi1>
    %39 = vector.broadcast %38 : vector<1x1x15xi1> to vector<8x8x15xi1>
    %40 = vector.shape_cast %36 : vector<8x8x1xf32> to vector<8x8x1xf32>
    %41 = vector.broadcast %40 : vector<8x8x1xf32> to vector<8x8x15xf32>
    %42 = vector.shape_cast %37 : vector<8x8x1xf32> to vector<8x8x1xf32>
    %43 = vector.broadcast %42 : vector<8x8x1xf32> to vector<8x8x15xf32>
    %44 = arith.select %39, %41, %43 : vector<8x8x15xi1>, vector<8x8x15xf32>
    %c0_28 = arith.constant 0 : index
    %c0_29 = arith.constant 0 : index
    %c0_30 = arith.constant 0 : index
    %45 = vector.load %arg3[%c0_28, %c0_29, %c0_30] : memref<8x8x15xf32, #tpu.memory_space<vmem>>, vector<8x8x15xf32>
    %46 = arith.mulf %44, %45 : vector<8x8x15xf32>
    %cst_31 = arith.constant dense<0.000000e+00> : vector<8x15xf32>
    %47 = vector.multi_reduction <add>, %46, %cst_31 [1] : vector<8x8x15xf32> to vector<8x15xf32>
    %c0_32 = arith.constant 0 : index
    %c0_33 = arith.constant 0 : index
    %48 = vector.load %arg13[%c0_32, %c0_33] : memref<8x15xf32, #tpu.memory_space<vmem>>, vector<8x15xf32>
    tpu.vector_store %arg13[%c0_32, %c0_33], %47 {strides = array<i32>} : memref<8x15xf32, #tpu.memory_space<vmem>>, vector<8x15xf32>,
    return
  }
  func.func @transform_0(%arg0: i32) -> (i32, i32) {
    %c0_i32 = arith.constant 0 : i32
    %c0_i32_0 = arith.constant 0 : i32
    return %arg0, %c0_i32 : i32, i32
  }
  func.func @transform_1(%arg0: i32) -> (i32, i32) {
    %c0_i32 = arith.constant 0 : i32
    %c0_i32_0 = arith.constant 0 : i32
    return %arg0, %c0_i32 : i32, i32
  }
  func.func @transform_2(%arg0: i32) -> (i32, i32, i32) {
    %c0_i32 = arith.constant 0 : i32
    %c0_i32_0 = arith.constant 0 : i32
    %c0_i32_1 = arith.constant 0 : i32
    return %arg0, %c0_i32, %c0_i32_0 : i32, i32, i32
  }
  func.func @transform_3(%arg0: i32) -> (i32, i32) {
    %c0_i32 = arith.constant 0 : i32
    %c0_i32_0 = arith.constant 0 : i32
    %c0_i32_1 = arith.constant 0 : i32
    return %c0_i32, %c0_i32_0 : i32, i32
  }
  func.func @transform_4(%arg0: i32) -> (i32, i32) {
    %c0_i32 = arith.constant 0 : i32
    %c0_i32_0 = arith.constant 0 : i32
    %c0_i32_1 = arith.constant 0 : i32
    return %c0_i32, %c0_i32_0 : i32, i32
  }
  func.func @transform_5(%arg0: i32) -> (i32, i32) {
    %c0_i32 = arith.constant 0 : i32
    %c0_i32_0 = arith.constant 0 : i32
    %c0_i32_1 = arith.constant 0 : i32
    return %c0_i32, %c0_i32_0 : i32, i32
  }
  func.func @transform_6(%arg0: i32) -> (i32, i32) {
    %c0_i32 = arith.constant 0 : i32
    %c0_i32_0 = arith.constant 0 : i32
    %c0_i32_1 = arith.constant 0 : i32
    return %c0_i32, %c0_i32_0 : i32, i32
  }
  func.func @transform_7(%arg0: i32) -> (i32, i32) {
    %c0_i32 = arith.constant 0 : i32
    %c0_i32_0 = arith.constant 0 : i32
    %c0_i32_1 = arith.constant 0 : i32
    return %c0_i32, %c0_i32_0 : i32, i32
  }
  func.func @transform_8(%arg0: i32) -> (i32, i32) {
    %c0_i32 = arith.constant 0 : i32
    %c0_i32_0 = arith.constant 0 : i32
    %c0_i32_1 = arith.constant 0 : i32
    return %c0_i32, %c0_i32_0 : i32, i32
  }
  func.func @transform_9(%arg0: i32) -> (i32, i32) {
    %c0_i32 = arith.constant 0 : i32
    %c0_i32_0 = arith.constant 0 : i32
    %c0_i32_1 = arith.constant 0 : i32
    return %c0_i32, %c0_i32_0 : i32, i32
  }
  func.func @transform_10(%arg0: i32) -> (i32, i32) {
    %c0_i32 = arith.constant 0 : i32
    %c0_i32_0 = arith.constant 0 : i32
    %c0_i32_1 = arith.constant 0 : i32
    return %c0_i32, %c0_i32_0 : i32, i32
  }
  func.func @transform_11(%arg0: i32) -> (i32, i32) {
    %c0_i32 = arith.constant 0 : i32
    %c0_i32_0 = arith.constant 0 : i32
    %c0_i32_1 = arith.constant 0 : i32
    return %c0_i32, %c0_i32_0 : i32, i32
  }
  func.func @transform_12(%arg0: i32) -> (i32, i32) {
    %c0_i32 = arith.constant 0 : i32
    %c0_i32_0 = arith.constant 0 : i32
    return %arg0, %c0_i32 : i32, i32
  }
}

</mosaic_0001>

<bundles_post_ra>
// kernel: block_forward.1
= control target key start
LH: loop header
LB: loop body
LE: loop exit
PB: predicated region body
PF: predicated region fallthrough
CT: control target
= control target key end

     0   :  { %17 = vsyncpa [#allocation3], 0  ;;  %s1564_s0 = inlined_call_operand.vmem [shape: f32[8,128], index: 0, kind: input, shape index: {}]   ;;  %s1565_s1 = inlined_call_operand.vmem [shape: f32[8,128], index: 1, kind: input, shape index: {}]   ;;  %s1566_s2 = inlined_call_operand.vmem [shape: f32[8,8,15], index: 2, kind: input, shape index: {}]   ;;  %s1567_s3 = inlined_call_operand.vmem [shape: f32[128,128], index: 3, kind: input, shape index: {}]   ;;  %s1568_s4 = inlined_call_operand.hbm [shape: f32[128,128], index: 4, kind: input, shape index: {}]   ;;  %s1569_s5 = inlined_call_operand.vmem [shape: f32[1,128], index: 5, kind: input, shape index: {}]   ;;  %s1570_s6 = inlined_call_operand.hbm [shape: f32[128,128], index: 6, kind: input, shape index: {}]   ;;  %s1571_s7 = inlined_call_operand.vmem [shape: f32[1,128], index: 7, kind: input, shape index: {}]   ;;  %s1572_s8 = inlined_call_operand.hbm [shape: f32[128,128], index: 8, kind: input, shape index: {}]   ;;  %s1573_s9 = inlined_call_operand.vmem [shape: f32[1,128], index: 9, kind: input, shape index: {}]   ;;  %s1574_s10 = inlined_call_operand.hbm [shape: f32[128,256], index: 10, kind: input, shape index: {}]   ;;  %s1575_s11 = inlined_call_operand.vmem [shape: f32[1,256], index: 11, kind: input, shape index: {}]   ;;  %s1576_s12 = inlined_call_operand.vmem [shape: f32[8,15], index: 12, kind: output, shape index: {}]  }
   0x1   :  { %18 = vsyncpa [#allocation5], 0 }
   0x2   :  { %19 = vsyncpa [#allocation8], 0  ;;  %s1255_s21 = smov [#allocation4]   ;;  %s1256_s23 = smov [#allocation2]  }
   0x3   :  { %s47_s22 = sshll.u32 %s1255_s21, 4  ;;  %s33_s24 = sshll.u32 %s1256_s23, 4  ;;  %s48_s22 = int_to_ptr.vmem [resolvable:$true] %s47_s22  ;;  %s1331_s24 = int_to_ptr.vmem [resolvable:$true] %s33_s24 }
   0x4   :  { %s1161_s27 = scalar_lea.hbm %s1570_s6, 2048 }
   0x5   :  { %p1162_p0 = scmp.ne.s32.totalorder %s1570_s6, %s1161_s27  ;;  %p1165_p1 = scmp.lt.u32.totalorder %s1161_s27, %s1570_s6 }
   0x7   :  { %p1167_p2 = pnand %p1165_p1, %p1162_p0 }
   0x9   :  { %1170 = shalt.err (!%p1167_p2)
}
   0xa   :  { %s1171_s14 = scalar_lea.vmem %s48_s22, 2048  ;;  %p1176_p4 = scmp.lt.s32.totalorder %s48_s22, %s48_s22 }
   0xb   :  { %p1172_p3 = scmp.ne.s32.totalorder %s48_s22, %s1171_s14  ;;  %p1177_p5 = scmp.lt.s32.totalorder %s1171_s14, %s1171_s14 }
   0xd   :  { %p1178_p6 = por %p1177_p5, %p1176_p4 }
   0xf   :  { %p1179_p7 = pnand %p1178_p6, %p1172_p3 }
  0x11   :  { %1182 = shalt.err (!%p1179_p7)
}
  0x12   :  { %s1257_s15 = smov 128   ;;  %s1258_s16 = smov 8  }
  0x13   :  { %53 = dma.hbm_to_vmem [thread:$0]  %s1570_s6, 2048, %s48_s22, [#allocation5], %s1257_s15, %s1257_s15, %s1258_s16  }
  0x14   :  { %s1183_s21 = scalar_lea.hbm %s1568_s4, 2048 }
  0x15   :  { %p1184_p8 = scmp.ne.s32.totalorder %s1568_s4, %s1183_s21  ;;  %p1187_p9 = scmp.lt.u32.totalorder %s1183_s21, %s1568_s4 }
  0x17   :  { %p1189_p10 = pnand %p1187_p9, %p1184_p8 }
  0x19   :  { %1192 = shalt.err (!%p1189_p10)
}
  0x1a   :  { %s1193_s28 = scalar_lea.vmem %s1331_s24, 2048  ;;  %p1198_p12 = scmp.lt.s32.totalorder %s1331_s24, %s1331_s24 }
  0x1b   :  { %p1194_p11 = scmp.ne.s32.totalorder %s1331_s24, %s1193_s28  ;;  %p1199_p13 = scmp.lt.s32.totalorder %s1193_s28, %s1193_s28 }
  0x1d   :  { %p1200_p0 = por %p1199_p13, %p1198_p12 }
  0x1f   :  { %p1201_p1 = pnand %p1200_p0, %p1194_p11 }
  0x21   :  { %1204 = shalt.err (!%p1201_p1)
}
  0x22   :  { %39 = dma.hbm_to_vmem [thread:$0]  %s1568_s4, 2048, %s1331_s24, [#allocation3], %s1257_s15, %s1257_s15, %s1258_s16  }
  0x23   :  { %s1259_s29 = smov [#allocation6]   ;;  %s1260_s13 = smov [#allocation7]  }
  0x24   :  { %s61_s30 = sshll.u32 %s1259_s29, 4  ;;  %s75_s14 = sshll.u32 %s1260_s13, 4  ;;  %s62_s30 = int_to_ptr.vmem [resolvable:$true] %s61_s30  ;;  %s1368_s14 = int_to_ptr.vmem [resolvable:$true] %s75_s14 }
  0x25   :  { %s1205_s19 = scalar_lea.hbm %s1572_s8, 2048 }
  0x26   :  { %p1206_p2 = scmp.ne.s32.totalorder %s1572_s8, %s1205_s19  ;;  %p1209_p3 = scmp.lt.u32.totalorder %s1205_s19, %s1572_s8 }
  0x28   :  { %p1211_p4 = pnand %p1209_p3, %p1206_p2 }
  0x2a   :  { %1214 = shalt.err (!%p1211_p4)
}
  0x2b   :  { %s1215_s4 = scalar_lea.vmem %s62_s30, 2048  ;;  %p1220_p6 = scmp.lt.s32.totalorder %s62_s30, %s62_s30 }
  0x2c   :  { %p1216_p5 = scmp.ne.s32.totalorder %s62_s30, %s1215_s4  ;;  %p1221_p7 = scmp.lt.s32.totalorder %s1215_s4, %s1215_s4 }
  0x2e   :  { %p1222_p8 = por %p1221_p7, %p1220_p6 }
  0x30   :  { %p1223_p9 = pnand %p1222_p8, %p1216_p5 }
  0x32   :  { %1226 = shalt.err (!%p1223_p9)
}
  0x33   :  { %67 = dma.hbm_to_vmem [thread:$0]  %s1572_s8, 2048, %s62_s30, [#allocation5], %s1257_s15, %s1257_s15, %s1258_s16  }
  0x34   :  { %s1227_s6 = scalar_lea.hbm %s1574_s10, 4096 }
  0x35   :  { %p1228_p10 = scmp.ne.s32.totalorder %s1574_s10, %s1227_s6  ;;  %p1231_p11 = scmp.lt.u32.totalorder %s1227_s6, %s1574_s10 }
  0x37   :  { %p1233_p12 = pnand %p1231_p11, %p1228_p10 }
  0x39   :  { %1236 = shalt.err (!%p1233_p12)
}
  0x3a   :  { %s1237_s18 = scalar_lea.vmem %s1368_s14, 4096  ;;  %p1242_p0 = scmp.lt.s32.totalorder %s1368_s14, %s1368_s14 }
  0x3b   :  { %p1238_p13 = scmp.ne.s32.totalorder %s1368_s14, %s1237_s18  ;;  %p1243_p1 = scmp.lt.s32.totalorder %s1237_s18, %s1237_s18 }
  0x3d   :  { %p1244_p2 = por %p1243_p1, %p1242_p0 }
  0x3f   :  { %p1245_p3 = pnand %p1244_p2, %p1238_p13 }
  0x41   :  { %1248 = shalt.err (!%p1245_p3)
}
  0x42   :  { %s1261_s8 = smov 256   ;;  %s1262_s15 = smov 16  }
  0x43   :  { %81 = dma.hbm_to_vmem [thread:$0]  %s1574_s10, 4096, %s1368_s14, [#allocation8], %s1261_s8, %s1261_s8, %s1262_s15  }
  0x44   :  { %1249 = dma.done.wait [#allocation3], 2048  }
  0x45   :  { %1250 = vsyncadd [#allocation3], 4294965248 }
  0x46   :  { %1251 = dma.done.wait [#allocation5], 4096  }
  0x47   :  { %1252 = vsyncadd [#allocation5], 4294963200 }
  0x48   :  { %1253 = dma.done.wait [#allocation8], 4096  }
  0x49   :  { %1254 = vsyncadd [#allocation8], 4294963200  ;;  %v1263_v0 = vmov 0.0|0.0   ;;  %vm1264_vm0 = vmmov 0   ;;  %v1265_v1 = vmov 0.0   ;;  %v114_v2 = vld [vmem:[#allocation2] sm:$0xff] }
  0x4a   :  { %1022 = vmatprep.subr.bf16.mxu0 %v1263_v0  ;;  %1046 = vmatprep.subr.bf16.mxu1 %v1263_v0  ;;  %v115_v3 = vld [vmem:[#allocation2 + $0x8] sm:$0xff]  ;;  %v97_v4 = vld [vmem:[%s1567_s3] sm:$0xff]  ;;  %v116_v7 = vld [vmem:[#allocation2 + $0x10] sm:$0xff]  ;;  %vm723_vm2 = vcmask 121856   ;;  %vm788_vm3 = vcmask 1041409   ;;  %vm790_vm4 = vcmask 1042434  }
  0x4b   :  { %914 = vmatprep.mubr.msk.f32.mxu0 %vm1264_vm0, %v1265_v1  ;;  %949 = vmatprep.mubr.msk.f32.mxu1 %vm1264_vm0, %v1265_v1  ;;  %v1023_v5 = vpack.c.bf16 %v115_v3, %v114_v2  ;;  %v98_v6 = vld [vmem:[%s1567_s3 + $0x8] sm:$0xff]  ;;  %v117_v8 = vld [vmem:[#allocation2 + $0x18] sm:$0xff]  ;;  %v99_v10 = vld [vmem:[%s1567_s3 + $0x10] sm:$0xff]  ;;  %vm792_vm5 = vcmask 1043459   ;;  %vm794_vm6 = vcmask 1044484   ;;  %vm796_vm7 = vcmask 1045509  }
  0x4c   :  { %v1047_v9 = vpack.c.bf16 %v98_v6, %v97_v4  ;;  %v100_v11 = vld [vmem:[%s1567_s3 + $0x18] sm:$0xff]  ;;  %v1026_v12 = vpack.c.bf16 %v117_v8, %v116_v7  ;;  %v118_v14 = vld [vmem:[#allocation2 + $0x20] sm:$0xff]  ;;  %v119_v15 = vld [vmem:[#allocation2 + $0x28] sm:$0xff]  ;;  %vm798_vm8 = vcmask 1046534   ;;  %vm800_vm9 = vcmask 1047559  }
  0x4d   :  { %1024 = vmatpush3.bf16.msra.mxu0 %v1023_v5  ;;  %v1050_v13 = vpack.c.bf16 %v100_v11, %v99_v10  ;;  %v101_v16 = vld [vmem:[%s1567_s3 + $0x20] sm:$0xff]  ;;  %v102_v17 = vld [vmem:[%s1567_s3 + $0x28] sm:$0xff]  ;;  %v1029_v18 = vpack.c.bf16 %v119_v15, %v118_v14  ;;  %v120_v20 = vld [vmem:[#allocation2 + $0x30] sm:$0xff] }
  0x4e   :  { %1048 = vmatpush3.bf16.msra.mxu1 %v1047_v9  ;;  %1025 = vmatprep.subr.bf16.mxu0 %v1263_v0  ;;  %v1053_v19 = vpack.c.bf16 %v102_v17, %v101_v16  ;;  %v121_v21 = vld [vmem:[#allocation2 + $0x38] sm:$0xff]  ;;  %v103_v22 = vld [vmem:[%s1567_s3 + $0x30] sm:$0xff]  ;;  %v122_v26 = vld [vmem:[#allocation2 + $0x40] sm:$0xff] }
  0x4f   :  { %1049 = vmatprep.subr.bf16.mxu1 %v1263_v0  ;;  %v104_v23 = vld [vmem:[%s1567_s3 + $0x38] sm:$0xff]  ;;  %v1032_v24 = vpack.c.bf16 %v121_v21, %v120_v20  ;;  %v123_v27 = vld [vmem:[#allocation2 + $0x48] sm:$0xff]  ;;  %v105_v28 = vld [vmem:[%s1567_s3 + $0x40] sm:$0xff] }
  0x50   :  { %v1056_v25 = vpack.c.bf16 %v104_v23, %v103_v22  ;;  %v106_v29 = vld [vmem:[%s1567_s3 + $0x48] sm:$0xff]  ;;  %v1035_v30 = vpack.c.bf16 %v123_v27, %v122_v26  ;;  %v124_v32 = vld [vmem:[#allocation2 + $0x50] sm:$0xff]  ;;  %v125_v33 = vld [vmem:[#allocation2 + $0x58] sm:$0xff] }
  0x51   :  { %1027 = vmatpush3.bf16.msra.mxu0 %v1026_v12  ;;  %v1059_v31 = vpack.c.bf16 %v106_v29, %v105_v28  ;;  %v107_v34 = vld [vmem:[%s1567_s3 + $0x50] sm:$0xff]  ;;  %v108_v35 = vld [vmem:[%s1567_s3 + $0x58] sm:$0xff]  ;;  %v1038_v36 = vpack.c.bf16 %v125_v33, %v124_v32  ;;  %v126_v38 = vld [vmem:[#allocation2 + $0x60] sm:$0xff] }
  0x52   :  { %1051 = vmatpush3.bf16.msra.mxu1 %v1050_v13  ;;  %1028 = vmatprep.subr.bf16.mxu0 %v1263_v0  ;;  %v1062_v37 = vpack.c.bf16 %v108_v35, %v107_v34  ;;  %v127_v39 = vld [vmem:[#allocation2 + $0x68] sm:$0xff]  ;;  %v109_v40 = vld [vmem:[%s1567_s3 + $0x60] sm:$0xff]  ;;  %v128_v44 = vld [vmem:[#allocation2 + $0x70] sm:$0xff] }
  0x53   :  { %1052 = vmatprep.subr.bf16.mxu1 %v1263_v0  ;;  %v110_v41 = vld [vmem:[%s1567_s3 + $0x68] sm:$0xff]  ;;  %v1041_v42 = vpack.c.bf16 %v127_v39, %v126_v38  ;;  %v129_v45 = vld [vmem:[#allocation2 + $0x78] sm:$0xff]  ;;  %v111_v46 = vld [vmem:[%s1567_s3 + $0x70] sm:$0xff] }
  0x54   :  { %v1065_v43 = vpack.c.bf16 %v110_v41, %v109_v40  ;;  %v112_v47 = vld [vmem:[%s1567_s3 + $0x78] sm:$0xff]  ;;  %v1044_v48 = vpack.c.bf16 %v129_v45, %v128_v44  ;;  %v279_v50 = vld [vmem:[#allocation4] sm:$0xff]  ;;  %v280_v51 = vld [vmem:[#allocation4 + $0x8] sm:$0xff] }
  0x55   :  { %1030 = vmatpush3.bf16.msra.mxu0 %v1029_v18  ;;  %v1068_v49 = vpack.c.bf16 %v112_v47, %v111_v46  ;;  %v113_v52 = vld [vmem:[%s1565_s1] sm:$0xff]  ;;  %v1071_v53 = vpack.c.bf16 %v280_v51, %v279_v50  ;;  %v281_v55 = vld [vmem:[#allocation4 + $0x10] sm:$0xff]  ;;  %v282_v56 = vld [vmem:[#allocation4 + $0x18] sm:$0xff] }
  0x56   :  { %1054 = vmatpush3.bf16.msra.mxu1 %v1053_v19  ;;  %1031 = vmatprep.subr.bf16.mxu0 %v1263_v0  ;;  %v96_v54 = vld [vmem:[%s1564_s0] sm:$0xff]  ;;  %v1074_v57 = vpack.c.bf16 %v282_v56, %v281_v55  ;;  %v284_v59 = vld [vmem:[#allocation4 + $0x28] sm:$0xff]  ;;  %v285_v61 = vld [vmem:[#allocation4 + $0x30] sm:$0xff] }
  0x57   :  { %1055 = vmatprep.subr.bf16.mxu1 %v1263_v0  ;;  %v283_v58 = vld [vmem:[#allocation4 + $0x20] sm:$0xff]  ;;  %v286_v62 = vld [vmem:[#allocation4 + $0x38] sm:$0xff]  ;;  %v288_v3 = vld [vmem:[#allocation4 + $0x48] sm:$0xff] }
  0x58   :  { %v1077_v60 = vpack.c.bf16 %v284_v59, %v283_v58  ;;  %v1080_v63 = vpack.c.bf16 %v286_v62, %v285_v61  ;;  %v287_v2 = vld [vmem:[#allocation4 + $0x40] sm:$0xff]  ;;  %v289_v5 = vld [vmem:[#allocation4 + $0x50] sm:$0xff]  ;;  %v290_v6 = vld [vmem:[#allocation4 + $0x58] sm:$0xff] }
  0x59   :  { %1033 = vmatpush3.bf16.msra.mxu0 %v1032_v24  ;;  %v1083_v4 = vpack.c.bf16 %v288_v3, %v287_v2  ;;  %v1086_v7 = vpack.c.bf16 %v290_v6, %v289_v5  ;;  %v291_v8 = vld [vmem:[#allocation4 + $0x60] sm:$0xff]  ;;  %v292_v9 = vld [vmem:[#allocation4 + $0x68] sm:$0xff]  ;;  %v293_v11 = vld [vmem:[#allocation4 + $0x70] sm:$0xff] }
  0x5a   :  { %1057 = vmatpush3.bf16.msra.mxu1 %v1056_v25  ;;  %1034 = vmatprep.subr.bf16.mxu0 %v1263_v0  ;;  %v1089_v10 = vpack.c.bf16 %v292_v9, %v291_v8  ;;  %v294_v12 = vld [vmem:[#allocation4 + $0x78] sm:$0xff]  ;;  %v373_v14 = vld [vmem:[#allocation6] sm:$0xff]  ;;  %v374_v15 = vld [vmem:[#allocation6 + $0x8] sm:$0xff] }
  0x5b   :  { %1058 = vmatprep.subr.bf16.mxu1 %v1263_v0  ;;  %v1092_v13 = vpack.c.bf16 %v294_v12, %v293_v11  ;;  %v375_v16 = vld [vmem:[#allocation6 + $0x10] sm:$0xff]  ;;  %v1095_v17 = vpack.c.bf16 %v374_v15, %v373_v14  ;;  %v376_v18 = vld [vmem:[#allocation6 + $0x18] sm:$0xff]  ;;  %v377_v20 = vld [vmem:[#allocation6 + $0x20] sm:$0xff] }
  0x5c   :  { %v1098_v19 = vpack.c.bf16 %v376_v18, %v375_v16  ;;  %v378_v21 = vld [vmem:[#allocation6 + $0x28] sm:$0xff]  ;;  %v379_v23 = vld [vmem:[#allocation6 + $0x30] sm:$0xff]  ;;  %v380_v24 = vld [vmem:[#allocation6 + $0x38] sm:$0xff] }
  0x5d   :  { %1036 = vmatpush3.bf16.msra.mxu0 %v1035_v30  ;;  %v1101_v22 = vpack.c.bf16 %v378_v21, %v377_v20  ;;  %v1104_v25 = vpack.c.bf16 %v380_v24, %v379_v23  ;;  %v381_v26 = vld [vmem:[#allocation6 + $0x40] sm:$0xff]  ;;  %v382_v27 = vld [vmem:[#allocation6 + $0x48] sm:$0xff]  ;;  %v383_v29 = vld [vmem:[#allocation6 + $0x50] sm:$0xff] }
  0x5e   :  { %1060 = vmatpush3.bf16.msra.mxu1 %v1059_v31  ;;  %1037 = vmatprep.subr.bf16.mxu0 %v1263_v0  ;;  %v1107_v28 = vpack.c.bf16 %v382_v27, %v381_v26  ;;  %v384_v30 = vld [vmem:[#allocation6 + $0x58] sm:$0xff]  ;;  %v385_v32 = vld [vmem:[#allocation6 + $0x60] sm:$0xff]  ;;  %v386_v33 = vld [vmem:[#allocation6 + $0x68] sm:$0xff] }
  0x5f   :  { %1061 = vmatprep.subr.bf16.mxu1 %v1263_v0  ;;  %v1110_v31 = vpack.c.bf16 %v384_v30, %v383_v29  ;;  %v1113_v34 = vpack.c.bf16 %v386_v33, %v385_v32  ;;  %v388_v44 = vld [vmem:[#allocation6 + $0x78] sm:$0xff]  ;;  %v468_v46 = vld [vmem:[#allocation7 + $0x8] sm:$0xff]  ;;  %v467_v47 = vld [vmem:[#allocation7] sm:$0xff] }
  0x60   :  { %v472_v50 = vld [vmem:[#allocation7 + $0x28] sm:$0xff]  ;;  %v474_v51 = vld [vmem:[#allocation7 + $0x38] sm:$0xff]  ;;  %v473_v55 = vld [vmem:[#allocation7 + $0x30] sm:$0xff] }
  0x61   :  { %1039 = vmatpush3.bf16.msra.mxu0 %v1038_v36  ;;  %v476_v56 = vld [vmem:[#allocation7 + $0x48] sm:$0xff]  ;;  %v475_v59 = vld [vmem:[#allocation7 + $0x40] sm:$0xff]  ;;  %v482_v62 = vld [vmem:[#allocation7 + $0x78] sm:$0xff] }
  0x62   :  { %1063 = vmatpush3.bf16.msra.mxu1 %v1062_v37  ;;  %1040 = vmatprep.subr.bf16.mxu0 %v1263_v0  ;;  %v811_v37 = vld [vmem:[%s1569_s5] ss:$0 sm:$0xff]  ;;  %v480_v61 = vld [vmem:[#allocation7 + $0x68] sm:$0xff]  ;;  %v486_v6 = vld [vmem:[#allocation7 + $0x98] sm:$0xff] }
  0x63   :  { %1064 = vmatprep.subr.bf16.mxu1 %v1263_v0  ;;  %v1130_v2 = vpack.c.bf16 %v482_v62, %v480_v61  ;;  %v479_v3 = vld [vmem:[#allocation7 + $0x60] sm:$0xff]  ;;  %v484_v5 = vld [vmem:[#allocation7 + $0x88] sm:$0xff]  ;;  %v490_v12 = vld [vmem:[#allocation7 + $0xb8] sm:$0xff] }
  0x64   :  { %v1134_v8 = vpack.c.bf16 %v486_v6, %v484_v5  ;;  %v483_v9 = vld [vmem:[#allocation7 + $0x80] sm:$0xff]  ;;  %v488_v11 = vld [vmem:[#allocation7 + $0xa8] sm:$0xff]  ;;  %v489_v16 = vld [vmem:[#allocation7 + $0xb0] sm:$0xff] }
  0x65   :  { %1042 = vmatpush3.bf16.msra.mxu0 %v1041_v42  ;;  %v1138_v14 = vpack.c.bf16 %v490_v12, %v488_v11  ;;  %v487_v15 = vld [vmem:[#allocation7 + $0xa0] sm:$0xff]  ;;  %v494_v18 = vld [vmem:[#allocation7 + $0xd8] sm:$0xff]  ;;  %v496_v29 = vld [vmem:[#allocation7 + $0xe8] sm:$0xff] }
  0x66   :  { %1066 = vmatpush3.bf16.msra.mxu1 %v1065_v43  ;;  %1043 = vmatprep.subr.bf16.mxu0 %v1263_v0  ;;  %v387_v43 = vld [vmem:[#allocation6 + $0x70] sm:$0xff]  ;;  %v491_v21 = vld [vmem:[#allocation7 + $0xc0] sm:$0xff]  ;;  %v498_v30 = vld [vmem:[#allocation7 + $0xf8] sm:$0xff] }
  0x67   :  { %1067 = vmatprep.subr.bf16.mxu1 %v1263_v0  ;;  %v1116_v45 = vpack.c.bf16 %v388_v44, %v387_v43  ;;  %v812_v24 = vld [vmem:[%s1571_s7] ss:$0 sm:$0xff]  ;;  %v497_v33 = vld [vmem:[#allocation7 + $0xf0] sm:$0xff] }
  0x68   :  { %v495_v32 = vld [vmem:[#allocation7 + $0xe0] sm:$0xff] }
  0x69   :  { %1045 = vmatpush3.bf16.msra.mxu0 %v1044_v48  ;;  %v499_v43 = vld [vmem:[%s1575_s11] sm:$0x3] }
  0x6a   :  { %1069 = vmatpush3.bf16.msra.mxu1 %v1068_v49  ;;  %1070 = vmatprep.subr.bf16.mxu0 %v1263_v0  ;;  %v469_v49 = vld [vmem:[#allocation7 + $0x10] sm:$0xff] }
  0x6b   :  { %1094 = vmatprep.subr.bf16.mxu1 %v1263_v0 }
  0x6c   :  { %915 = vmatmul.mubr.f32.vlgmr.msra.gmra.mrb[0].mxu0 %v113_v52  ;;  %v1120_v52 = vpack.c.bf16 %v469_v49, %v467_v47 }
  0x6d   :  { %950 = vmatmul.mubr.f32.vlgmr.msra.gmra.mrb[0].mxu1 %v96_v54  ;;  %1072 = vmatpush3.bf16.msra.mxu0 %v1071_v53  ;;  %v1122_v53 = vpack.c.bf16 %v474_v51, %v472_v50  ;;  %v471_v54 = vld [vmem:[#allocation7 + $0x20] sm:$0xff] }
  0x6e   :  { %1073 = vmatprep.subr.bf16.mxu0 %v1263_v0  ;;  %984 = vmatprep.mubr.msk.f32.mxu0 %vm1264_vm0, %v1265_v1 }
  0x6f   :  { %1019 = vmatprep.mubr.msk.f32.mxu1 %vm1264_vm0, %v1265_v1  ;;  %1096 = vmatpush3.bf16.msra.mxu1 %v1095_v17  ;;  %v492_v17 = vld [vmem:[#allocation7 + $0xc8] sm:$0xff] }
  0x70   :  { %1097 = vmatprep.subr.bf16.mxu1 %v1263_v0  ;;  %v1142_v20 = vpack.c.bf16 %v494_v18, %v492_v17 }
  0x71   :  { %1075 = vmatpush3.bf16.msra.mxu0 %v1074_v57  ;;  %v478_v57 = vld [vmem:[#allocation7 + $0x58] sm:$0xff] }
  0x72   :  { %1076 = vmatprep.subr.bf16.mxu0 %v1263_v0  ;;  %v1126_v58 = vpack.c.bf16 %v478_v57, %v476_v56 }
  0x73   :  { %1099 = vmatpush3.bf16.msra.mxu1 %v1098_v19  ;;  %v1140_v19 = vpack.c.bf16 %v489_v16, %v487_v15  ;;  %v707_v16 = vld [vmem:[%s1566_s2] sm:$0xff] }
  0x74   :  { %1100 = vmatprep.subr.bf16.mxu1 %v1263_v0 }
  0x75   :  { %1078 = vmatpush3.bf16.msra.mxu0 %v1077_v60  ;;  %v477_v60 = vld [vmem:[#allocation7 + $0x50] sm:$0xff] }
  0x76   :  { %1079 = vmatprep.subr.bf16.mxu0 %v1263_v0 }
  0x77   :  { %1102 = vmatpush3.bf16.msra.mxu1 %v1101_v22  ;;  %v493_v22 = vld [vmem:[#allocation7 + $0xd0] sm:$0xff] }
  0x78   :  { %1103 = vmatprep.subr.bf16.mxu1 %v1263_v0  ;;  %v1144_v23 = vpack.c.bf16 %v493_v22, %v491_v21 }
  0x79   :  { %1081 = vmatpush3.bf16.msra.mxu0 %v1080_v63  ;;  %v1128_v63 = vpack.c.bf16 %v477_v60, %v475_v59 }
  0x7a   :  { %1082 = vmatprep.subr.bf16.mxu0 %v1263_v0 }
  0x7b   :  { %1105 = vmatpush3.bf16.msra.mxu1 %v1104_v25 }
  0x7c   :  { %1106 = vmatprep.subr.bf16.mxu1 %v1263_v0 }
  0x7d   :  { %1084 = vmatpush3.bf16.msra.mxu0 %v1083_v4  ;;  %v481_v4 = vld [vmem:[#allocation7 + $0x70] sm:$0xff] }
  0x7e   :  { %1085 = vmatprep.subr.bf16.mxu0 %v1263_v0 }
  0x7f   :  { %1108 = vmatpush3.bf16.msra.mxu1 %v1107_v28 }
  0x80   :  { %1109 = vmatprep.subr.bf16.mxu1 %v1263_v0 }
  0x81   :  { %1087 = vmatpush3.bf16.msra.mxu0 %v1086_v7  ;;  %v1132_v7 = vpack.c.bf16 %v481_v4, %v479_v3 }
  0x82   :  { %1088 = vmatprep.subr.bf16.mxu0 %v1263_v0 }
  0x83   :  { %1111 = vmatpush3.bf16.msra.mxu1 %v1110_v31  ;;  %v1146_v31 = vpack.c.bf16 %v498_v30, %v496_v29 }
  0x84   :  { %1112 = vmatprep.subr.bf16.mxu1 %v1263_v0 }
  0x85   :  { %1090 = vmatpush3.bf16.msra.mxu0 %v1089_v10  ;;  %v485_v10 = vld [vmem:[#allocation7 + $0x90] sm:$0xff] }
  0x86   :  { %1091 = vmatprep.subr.bf16.mxu0 %v1263_v0 }
  0x87   :  { %1114 = vmatpush3.bf16.msra.mxu1 %v1113_v34  ;;  %v1148_v34 = vpack.c.bf16 %v497_v33, %v495_v32 }
  0x88   :  { %1115 = vmatprep.subr.bf16.mxu1 %v1263_v0  ;;  %v470_v0 = vld [vmem:[#allocation7 + $0x18] sm:$0xff] }
  0x89   :  { %1093 = vmatpush3.bf16.msra.mxu0 %v1092_v13  ;;  %v1118_v48 = vpack.c.bf16 %v470_v0, %v468_v46  ;;  %v1136_v13 = vpack.c.bf16 %v485_v10, %v483_v9 }
  0x8b   :  { %1117 = vmatpush3.bf16.msra.mxu1 %v1116_v45  ;;  %1119 = vmatprep.subr.bf16.mxu0 %v1118_v48 }
 0x13f   :  { %v196_v35 = vpop.f32.mrb[0].mxu0 }
 0x140   :  { %v266_v36 = vpop.f32.mrb[0].mxu1  ;;  %v916_v38 = vpop.f32.mrb[1].mxu0 }
 0x141   :  { %v267_v39 = vadd.f32 %v266_v36, %v196_v35  ;;  %v951_v40 = vpop.f32.mrb[1].mxu1  ;;  %v813_v35 = vld [vmem:[%s1573_s9] ss:$0 sm:$0xff] }
 0x142   :  { %v501_v40 = vlaneseq }
 0x143   :  { %v277_v41 = vadd.f32 %v811_v37, %v267_v39 }
 0x144   :  { %v1509_v10 = vand.u32 127, %v501_v40 }
 0x145   :  { %v278_v42 = vmax.f32 %v277_v41, 0.0  ;;  %v502_v41 = vshrl.u32 %v501_v40, 7 }
 0x146   :  { %vm584_vm1 = vcmp.lt.s32.totalorder %v1509_v10, 10 }
 0x147   :  { %985 = vmatmul.mubr.f32.vlgmr.msra.gmra.mrb[2].mxu0 %v278_v42  ;;  %v503_v42 = vsub.s32 0, %v502_v41  ;;  %v507_v44 = vsub.s32 1, %v502_v41  ;;  %v608_v56 = vsub.s32 3, %v502_v41  ;;  %v622_v61 = vsub.s32 5, %v502_v41 }
 0x148   :  { %575 = vmatprep.mubr.f32.mxu0 %v1265_v1  ;;  %1121 = vmatpush1.bf16.msra.mxu0 %v1120_v52  ;;  %v1124_v1 = vpack.c.bf16 %v473_v55, %v471_v54  ;;  %v636_v5 = vsub.s32 7, %v502_v41 }
 0x149   :  { %1123 = vmatprep.subr.bf16.mxu0 %v1122_v53  ;;  %v504_v45 = vrot.slane %v499_v43, %v503_v42  ;;  %v508_v46 = vrot.slane %v499_v43, %v507_v44  ;;  %v601_v53 = vsub.s32 2, %v502_v41 }
 0x14c   :  { %1125 = vmatpush1.bf16.msra.mxu0 %v1124_v1 }
 0x14d   :  { %1127 = vmatprep.subr.bf16.mxu0 %v1126_v58  ;;  %v615_v58 = vsub.s32 4, %v502_v41 }
 0x150   :  { %1129 = vmatpush1.bf16.msra.mxu0 %v1128_v63 }
 0x151   :  { %1131 = vmatprep.subr.bf16.mxu0 %v1130_v2  ;;  %v629_v2 = vsub.s32 6, %v502_v41 }
 0x154   :  { %1133 = vmatpush1.bf16.msra.mxu0 %v1132_v7 }
 0x155   :  { %1135 = vmatprep.subr.bf16.mxu0 %v1134_v8 }
 0x158   :  { %1137 = vmatpush1.bf16.msra.mxu0 %v1136_v13 }
 0x159   :  { %1139 = vmatprep.subr.bf16.mxu0 %v1138_v14  ;;  %v708_v14 = vld [vmem:[%s1566_s2 + $0x8] sm:$0xff] }
 0x15c   :  { %1141 = vmatpush1.bf16.msra.mxu0 %v1140_v19  ;;  %v709_v19 = vld [vmem:[%s1566_s2 + $0x10] sm:$0xff] }
 0x15d   :  { %1143 = vmatprep.subr.bf16.mxu0 %v1142_v20 }
 0x160   :  { %1145 = vmatpush1.bf16.msra.mxu0 %v1144_v23 }
 0x161   :  { %1147 = vmatprep.subr.bf16.mxu0 %v1146_v31 }
 0x164   :  { %1149 = vmatpush1.bf16.msra.mxu0 %v1148_v34 }
 0x21a   :  { %v368_v25 = vpop.f32.mrb[2].mxu0 }
 0x21b   :  { %v369_v26 = vadd.f32 %v812_v24, %v368_v25  ;;  %v986_v27 = vpop.f32.mrb[3].mxu0 }
 0x21d   :  { %v372_v28 = vmax.f32 %v369_v26, 0.0  ;;  %v710_v26 = vld [vmem:[%s1566_s2 + $0x18] sm:$0xff] }
 0x21f   :  { %1020 = vmatmul.mubr.f32.vlgmr.msra.gmra.mrb[2].mxu1 %v372_v28 }
 0x2f2   :  { %v462_v36 = vpop.f32.mrb[2].mxu1 }
 0x2f3   :  { %v463_v37 = vadd.f32 %v813_v35, %v462_v36  ;;  %v1021_v38 = vpop.f32.mrb[3].mxu1  ;;  %v711_v35 = vld [vmem:[%s1566_s2 + $0x20] sm:$0xff] }
 0x2f5   :  { %v466_v39 = vmax.f32 %v463_v37, 0.0 }
 0x2f7   :  { %576 = vmatmul.mubr.f32.vlgmr.msra.gmra.mrb[4].mxu0 %v466_v39 }
 0x3ca   :  { %v577_v0 = vpop.f32.mrb[4].mxu0 }
 0x3cb   :  { %v578_v47 = vadd.f32 %v577_v0, %v504_v45  ;;  %v579_v48 = vpop.f32.mrb[5].mxu0  ;;  %v712_v0 = vld [vmem:[%s1566_s2 + $0x28] sm:$0xff] }
 0x3cc   :  { %v580_v49 = vadd.f32 %v579_v48, %v508_v46 }
 0x3cd   :  { %v588_v50 = vrot.slane %v578_v47, %v503_v42  ;;  %v595_v52 = vrot.slane %v578_v47, %v507_v44  ;;  %v602_v55 = vrot.slane %v578_v47, %v601_v53  ;;  %v609_v1 = vrot.slane %v578_v47, %v608_v56 }
 0x3ce   :  { %v644_v51 = vrot.slane %v580_v49, %v503_v42  ;;  %v651_v54 = vrot.slane %v580_v49, %v507_v44  ;;  %v658_v57 = vrot.slane %v580_v49, %v601_v53  ;;  %v665_v59 = vrot.slane %v580_v49, %v608_v56 }
 0x3cf   :  { %590 = vbcast.lane.b32.xlu0 %v588_v50, 256  ;;  %v616_v60 = vrot.slane %v578_v47, %v615_v58  ;;  %v672_v62 = vrot.slane %v580_v49, %v615_v58  ;;  %v623_v63 = vrot.slane %v578_v47, %v622_v61  ;;  %v679_v3 = vrot.slane %v580_v49, %v622_v61 }
 0x3d0   :  { %646 = vbcast.lane.b32.xlu1 %v644_v51, 256  ;;  %v630_v4 = vrot.slane %v578_v47, %v629_v2  ;;  %v686_v6 = vrot.slane %v580_v49, %v629_v2  ;;  %v637_v7 = vrot.slane %v578_v47, %v636_v5  ;;  %v693_v8 = vrot.slane %v580_v49, %v636_v5  ;;  %v714_v5 = vld [vmem:[%s1566_s2 + $0x38] sm:$0xff] }
 0x3d3   :  { %597 = vbcast.lane.b32.xlu0 %v595_v52, 256 }
 0x3d4   :  { %653 = vbcast.lane.b32.xlu1 %v651_v54, 256 }
 0x3d7   :  { %604 = vbcast.lane.b32.xlu0 %v602_v55, 256 }
 0x3d8   :  { %660 = vbcast.lane.b32.xlu1 %v658_v57, 256  ;;  %v713_v57 = vld [vmem:[%s1566_s2 + $0x30] sm:$0xff] }
 0x3db   :  { %611 = vbcast.lane.b32.xlu0 %v609_v1, 256 }
 0x3dc   :  { %667 = vbcast.lane.b32.xlu1 %v665_v59, 256 }
 0x3df   :  { %618 = vbcast.lane.b32.xlu0 %v616_v60, 256 }
 0x3e0   :  { %674 = vbcast.lane.b32.xlu1 %v672_v62, 256 }
 0x3e3   :  { %625 = vbcast.lane.b32.xlu0 %v623_v63, 256 }
 0x3e4   :  { %681 = vbcast.lane.b32.xlu1 %v679_v3, 256 }
 0x3e7   :  { %632 = vbcast.lane.b32.xlu0 %v630_v4, 256 }
 0x3e8   :  { %688 = vbcast.lane.b32.xlu1 %v686_v6, 256 }
 0x3eb   :  { %639 = vbcast.lane.b32.xlu0 %v637_v7, 256 }
 0x3ec   :  { %695 = vbcast.lane.b32.xlu1 %v693_v8, 256 }
 0x441   :  { %v591_v9 = vpop.permute.xlu0 %590 }
 0x442   :  { %v647_v11 = vpop.permute.xlu1 %646 }
 0x443   :  { %v699_v17 = vsel %vm584_vm1, %v591_v9, %v647_v11 }
 0x444   :  { %v715_v23 = vmul.f32 %v707_v16, %v699_v17 }
 0x445   :  { %v598_v12 = vpop.permute.xlu0 %597 }
 0x446   :  { %v654_v13 = vpop.permute.xlu1 %653  ;;  %v724_v31 = vsel %vm723_vm2, %v715_v23, 0.0 }
 0x447   :  { %v700_v15 = vsel %vm584_vm1, %v598_v12, %v654_v13  ;;  %v725_v39 = vrot.slane %v724_v31, 4 }
 0x448   :  { %v716_v20 = vmul.f32 %v708_v14, %v700_v15 }
 0x449   :  { %v605_v18 = vpop.permute.xlu0 %604  ;;  %v726_v48 = vadd.f32 %v725_v39, %v724_v31 }
 0x44a   :  { %v661_v21 = vpop.permute.xlu1 %660  ;;  %v731_v27 = vsel %vm723_vm2, %v716_v20, 0.0 }
 0x44b   :  { %v701_v22 = vsel %vm584_vm1, %v605_v18, %v661_v21  ;;  %v732_v33 = vrot.slane %v731_v27, 4  ;;  %v727_v58 = vrot.slane %v726_v48, 2 }
 0x44c   :  { %v717_v24 = vmul.f32 %v709_v19, %v701_v22 }
 0x44d   :  { %v612_v25 = vpop.permute.xlu0 %611  ;;  %v733_v43 = vadd.f32 %v732_v33, %v731_v27  ;;  %v728_v9 = vadd.f32 %v727_v58, %v726_v48 }
 0x44e   :  { %v668_v28 = vpop.permute.xlu1 %667  ;;  %v738_v29 = vsel %vm723_vm2, %v717_v24, 0.0 }
 0x44f   :  { %v702_v30 = vsel %vm584_vm1, %v612_v25, %v668_v28  ;;  %v739_v36 = vrot.slane %v738_v29, 4  ;;  %v734_v52 = vrot.slane %v733_v43, 2  ;;  %v729_v23 = vrot.slane %v728_v9, 1 }
 0x450   :  { %v718_v32 = vmul.f32 %v710_v26, %v702_v30 }
 0x451   :  { %v619_v34 = vpop.permute.xlu0 %618  ;;  %v740_v45 = vadd.f32 %v739_v36, %v738_v29  ;;  %v735_v2 = vadd.f32 %v734_v52, %v733_v43 }
 0x452   :  { %v745_v37 = vsel %vm723_vm2, %v718_v32, 0.0  ;;  %v675_v38 = vpop.permute.xlu1 %674  ;;  %v730_v32 = vadd.f32 %v729_v23, %v728_v9 }
 0x453   :  { %v746_v40 = vrot.slane %v745_v37, 4  ;;  %v703_v41 = vsel %vm584_vm1, %v619_v34, %v675_v38  ;;  %v741_v56 = vrot.slane %v740_v45, 2  ;;  %v736_v18 = vrot.slane %v735_v2, 1 }
 0x454   :  { %v719_v42 = vmul.f32 %v711_v35, %v703_v41 }
 0x455   :  { %v626_v44 = vpop.permute.xlu0 %625  ;;  %v747_v49 = vadd.f32 %v746_v40, %v745_v37  ;;  %v742_v6 = vadd.f32 %v741_v56, %v740_v45  ;;  %v737_v28 = vadd.f32 %v736_v18, %v735_v2 }
 0x456   :  { %v752_v46 = vsel %vm723_vm2, %v719_v42, 0.0  ;;  %v682_v47 = vpop.permute.xlu1 %681 }
 0x457   :  { %v753_v50 = vrot.slane %v752_v46, 4  ;;  %v704_v51 = vsel %vm584_vm1, %v626_v44, %v682_v47  ;;  %v748_v59 = vrot.slane %v747_v49, 2  ;;  %v743_v19 = vrot.slane %v742_v6, 1 }
 0x458   :  { %v720_v54 = vmul.f32 %v712_v0, %v704_v51  ;;  %v789_v37 = vsel %vm788_vm3, %v737_v28, %v730_v32 }
 0x459   :  { %v754_v53 = vadd.f32 %v753_v50, %v752_v46  ;;  %v633_v55 = vpop.permute.xlu0 %632  ;;  %v749_v11 = vadd.f32 %v748_v59, %v747_v49  ;;  %v744_v10 = vadd.f32 %v743_v19, %v742_v6 }
 0x45a   :  { %v689_v1 = vpop.permute.xlu1 %688  ;;  %v759_v60 = vsel %vm723_vm2, %v720_v54, 0.0 }
 0x45b   :  { %v755_v61 = vrot.slane %v754_v53, 2  ;;  %v760_v62 = vrot.slane %v759_v60, 4  ;;  %v705_v63 = vsel %vm584_vm1, %v633_v55, %v689_v1  ;;  %v750_v24 = vrot.slane %v749_v11, 1 }
 0x45c   :  { %v721_v3 = vmul.f32 %v713_v57, %v705_v63  ;;  %v791_v40 = vsel %vm790_vm4, %v744_v10, %v789_v37 }
 0x45d   :  { %v640_v4 = vpop.permute.xlu0 %639  ;;  %v761_v7 = vadd.f32 %v760_v62, %v759_v60  ;;  %v756_v14 = vadd.f32 %v755_v61, %v754_v53  ;;  %v751_v33 = vadd.f32 %v750_v24, %v749_v11 }
 0x45e   :  { %v696_v8 = vpop.permute.xlu1 %695  ;;  %v766_v12 = vsel %vm723_vm2, %v721_v3, 0.0 }
 0x45f   :  { %v706_v13 = vsel %vm584_vm1, %v640_v4, %v696_v8  ;;  %v762_v15 = vrot.slane %v761_v7, 2  ;;  %v767_v16 = vrot.slane %v766_v12, 4  ;;  %v757_v26 = vrot.slane %v756_v14, 1 }
 0x460   :  { %v722_v17 = vmul.f32 %v714_v5, %v706_v13  ;;  %v793_v42 = vsel %vm792_vm5, %v751_v33, %v791_v40 }
 0x461   :  { %v763_v20 = vadd.f32 %v762_v15, %v761_v7  ;;  %v768_v21 = vadd.f32 %v767_v16, %v766_v12  ;;  %v758_v35 = vadd.f32 %v757_v26, %v756_v14 }
 0x462   :  { %v773_v22 = vsel %vm723_vm2, %v722_v17, 0.0 }
 0x463   :  { %v774_v25 = vrot.slane %v773_v22, 4  ;;  %v769_v27 = vrot.slane %v768_v21, 2  ;;  %v764_v29 = vrot.slane %v763_v20, 1  ;;  %v795_v44 = vsel %vm794_vm6, %v758_v35, %v793_v42 }
 0x465   :  { %v775_v30 = vadd.f32 %v774_v25, %v773_v22  ;;  %v770_v31 = vadd.f32 %v769_v27, %v768_v21  ;;  %v765_v38 = vadd.f32 %v764_v29, %v763_v20 }
 0x467   :  { %v776_v34 = vrot.slane %v775_v30, 2  ;;  %v771_v36 = vrot.slane %v770_v31, 1  ;;  %v797_v45 = vsel %vm796_vm7, %v765_v38, %v795_v44 }
 0x469   :  { %v777_v39 = vadd.f32 %v776_v34, %v775_v30  ;;  %v772_v41 = vadd.f32 %v771_v36, %v770_v31 }
 0x46b   :  { %v778_v43 = vrot.slane %v777_v39, 1  ;;  %v799_v0 = vsel %vm798_vm8, %v772_v41, %v797_v45 }
 0x46d   :  { %v779_v46 = vadd.f32 %v778_v43, %v777_v39 }
 0x46f   :  { %v801_v47 = vsel %vm800_vm9, %v779_v46, %v799_v0 }
 0x470   :  { %803 = vst.msk [vmem:[%s1576_s12] sm:$0xff] %vm723_vm2, %v801_v47 }
 0x471   :  { %808 = vsyncpa [#allocation3], 1 }
 0x472   :  { %809 = vsyncpa [#allocation5], 1 }
 0x473   :  { %810 = vsyncpa [#allocation8], 1 }

</bundles_post_ra>
